<compile_context>
chip_gen: v5e
topology: v5e:2x2
jax: 0.10.0
libtpu: 0.0.40
codegen_flags: <defaults>
</compile_context>

<pallas_src>
import functools
import math

import jax
import jax.numpy as jnp
from jax.experimental import pallas as pl
from jax.experimental.pallas import tpu as pltpu

_LANE = 128
_SMALL_SUFFIX = 16          # suffix <= this -> moveaxis + lane-dense last-axis path
_INT32_BIG = 2**31 - 1


# ---------------------------------------------------------------------------
# helpers
# ---------------------------------------------------------------------------
def _dtype_min(dtype):
    dtype = jnp.dtype(dtype)
    if jnp.issubdtype(dtype, jnp.floating):
        return float("-inf")
    return int(jnp.iinfo(dtype).min)


def _round_down(v, m):
    return (v // m) * m


def _native_sublane(dtype):
    """Dtype-native sublane multiple: 8 for 4B, 16 for 2B, 32 for 1B dtypes."""
    return max(8, 32 // max(jnp.dtype(dtype).itemsize, 1))


@functools.lru_cache(maxsize=1)
def _default_block_budget_bytes():
    """Per-input-block byte budget (Pallas double-buffers it)."""
    base = 2 << 20  # v5e/v6e: ~85% of HBM roofline, fits v5e's 16 MiB scoped VMEM
    try:
        info = pltpu.get_tpu_info()
        vmem = int(getattr(info, "vmem_capacity_bytes", 0) or 0)
        if 0 < vmem <= (64 << 20):
            # v7x-class chip (64 MiB VMEM, ~3.2 TB/s HBM): bigger blocks amortize the
            # ~0.35us per-grid-step overhead; 2 x 6 MiB still fits the 32 MiB default.
            return 6 << 20
    except Exception:
        pass
    return base


# ---------------------------------------------------------------------------
# kernels
# ---------------------------------------------------------------------------
def _argmax_last_axis_kernel(x_ref, o_ref, rmax_ref, ridx_ref, *,
                             tile_c, c_total, neutral, lane_dense):
    """argmax over the lane axis of (tile_r, tile_c) blocks; C tiled on grid axis 1."""
    kc = pl.program_id(1)

    @pl.when(kc == 0)
    def _():
        rmax_ref[...] = jnp.full(rmax_ref.shape, neutral, rmax_ref.dtype)
        ridx_ref[...] = jnp.full(ridx_ref.shape, _INT32_BIG, jnp.int32)

    x = x_ref[...]                                             # (tile_r, tile_c)
    col = jax.lax.broadcasted_iota(jnp.int32, x.shape, 1)
    if c_total % tile_c != 0:                                  # ragged reduction tail
        x = jnp.where(kc * tile_c + col < c_total, x,
                      jnp.asarray(neutral, dtype=x.dtype))

    bmax = jnp.max(x, axis=1, keepdims=True)                   # (tile_r, 1)
    bidx = jnp.min(jnp.where(x == bmax, col, jnp.int32(tile_c)),
                   axis=1, keepdims=True) + kc * tile_c        # global column index

    cur_max, cur_idx = rmax_ref[...], ridx_ref[...]
    better = (bmax > cur_max) | ((bmax == cur_max) & (bidx < cur_idx))
    rmax_ref[...] = jnp.where(better, bmax, cur_max)
    ridx_ref[...] = jnp.where(better, bidx, cur_idx)

    @pl.when(kc == pl.num_programs(1) - 1)
    def _():
        if lane_dense:
            # Cheap XLU transpose -> (1, tile_r) lane-dense (unmasked) store.
            o_ref[...] = jnp.transpose(ridx_ref[...])
        else:
            o_ref[...] = ridx_ref[...]                         # tiny output; masked ok


def _argmax_mid_axis_kernel(x_ref, o_ref, rmax_ref, ridx_ref, *,
                            tile_c, c_total, neutral):
    """argmax over the middle (sublane) axis of (tile_p, tile_c, tile_l) blocks."""
    kc = pl.program_id(2)

    @pl.when(kc == 0)
    def _():
        rmax_ref[...] = jnp.full(rmax_ref.shape, neutral, rmax_ref.dtype)
        ridx_ref[...] = jnp.full(ridx_ref.shape, _INT32_BIG, jnp.int32)

    x = x_ref[...]                                             # (tile_p, tile_c, tile_l)
    cidx = jax.lax.broadcasted_iota(jnp.int32, x.shape, 1)
    if c_total % tile_c != 0:                                  # ragged reduction tail
        x = jnp.where(kc * tile_c + cidx < c_total, x,
                      jnp.asarray(neutral, dtype=x.dtype))

    bmax = jnp.max(x, axis=1, keepdims=True)                   # (tile_p, 1, tile_l)
    bidx = jnp.min(jnp.where(x == bmax, cidx, jnp.int32(tile_c)),
                   axis=1, keepdims=True) + kc * tile_c

    cur_max, cur_idx = rmax_ref[...], ridx_ref[...]
    better = (bmax > cur_max) | ((bmax == cur_max) & (bidx < cur_idx))
    rmax_ref[...] = jnp.where(better, bmax, cur_max)
    ridx_ref[...] = jnp.where(better, bidx, cur_idx)

    @pl.when(kc == pl.num_programs(2) - 1)
    def _():
        o_ref[...] = ridx_ref[...]


def _argmax_flat_partial_kernel(x_ref, pmax_ref, pidx_ref, *,
                                tile_r, tile_c, rows, cols, neutral):
    """Stage 1 of the global argmax: per-block (max, flat idx) partial, fully parallel."""
    i = pl.program_id(0)
    j = pl.program_id(1)
    x = x_ref[...]                                             # (tile_r, tile_c)
    r = jax.lax.broadcasted_iota(jnp.int32, x.shape, 0)
    c = jax.lax.broadcasted_iota(jnp.int32, x.shape, 1)

    valid = None
    if rows % tile_r:
        valid = (i * tile_r + r) < rows
    if cols % tile_c:
        cvalid = (j * tile_c + c) < cols
        valid = cvalid if valid is None else (valid & cvalid)
    if valid is not None:
        x = jnp.where(valid, x, jnp.asarray(neutral, dtype=x.dtype))

    bmax = jnp.max(x, keepdims=True)                           # (1, 1)
    hit = x == bmax
    if valid is not None:
        hit = hit & valid
    flat_local = r * cols + c                                  # scalar block offset added after reduce
    bidx = jnp.min(jnp.where(hit, flat_local, jnp.int32(tile_r * cols)), keepdims=True)
    offset = i * (tile_r * cols) + j * tile_c

    # Broadcast to a 128-lane slot so every partial store is lane-dense.
    pmax_ref[...] = jnp.broadcast_to(bmax, pmax_ref.shape)
    pidx_ref[...] = jnp.broadcast_to(bidx + offset, pidx_ref.shape)


# ---------------------------------------------------------------------------
# wrappers
# ---------------------------------------------------------------------------
def _argmax_last_axis(x2, budget):
    """argmax over the last axis of a 2-D array; returns a flat (rows,) int32 vector."""
    rows, C = x2.shape
    itemsize = jnp.dtype(x2.dtype).itemsize

    # Row tile: full if small, else a multiple of 128 (lane-dense transposed output).
    if rows <= _LANE:
        tile_r = rows
    else:
        groups_fit = max(1, budget // max(_LANE * C * itemsize, 1))
        tile_r = _LANE * min(groups_fit, rows // _LANE)
    # Reduction tile: full C if it fits the budget, else 128-multiples (carry in scratch).
    if tile_r * C * itemsize <= budget or C <= _LANE:
        tile_c = C
    else:
        tile_c = max(_LANE, _round_down(budget // (tile_r * itemsize), _LANE))
        tile_c = min(tile_c, _round_down(C, _LANE))

    lane_dense = (tile_r % _LANE == 0)
    neutral = _dtype_min(x2.dtype)
    kernel = functools.partial(_argmax_last_axis_kernel, tile_c=tile_c, c_total=C,
                               neutral=neutral, lane_dense=lane_dense)
    if lane_dense:
        out_shape = jax.ShapeDtypeStruct((1, rows), jnp.int32)
        out_spec = pl.BlockSpec((1, tile_r), lambda i, k: (0, i))
    else:
        out_shape = jax.ShapeDtypeStruct((rows, 1), jnp.int32)
        out_spec = pl.BlockSpec((tile_r, 1), lambda i, k: (i, 0))

    out = pl.pallas_call(
        kernel,
        out_shape=out_shape,
        grid=(pl.cdiv(rows, tile_r), pl.cdiv(C, tile_c)),
        in_specs=[pl.BlockSpec((tile_r, tile_c), lambda i, k: (i, k))],
        out_specs=out_spec,
        scratch_shapes=[pltpu.VMEM((tile_r, 1), x2.dtype),
                        pltpu.VMEM((tile_r, 1), jnp.int32)],
        compiler_params=pltpu.CompilerParams(
            dimension_semantics=("parallel", "arbitrary")),
    )(x2)
    return out.reshape(rows)


def _argmax_mid_axis(x3, budget):
    """argmax over the middle axis of a (P, C, S) array; returns (P, 1, S) int32."""
    P, C, S = x3.shape
    itemsize = jnp.dtype(x3.dtype).itemsize
    sub = _native_sublane(x3.dtype)

    if C * S * itemsize <= budget:
        tile_c, tile_l = C, S
    else:
        # Shrink the lane tile first (down to 128), then tile C if still too big.
        tile_l = S if S <= _LANE else min(
            _round_down(S, _LANE),
            max(_LANE, _round_down(budget // max(C * itemsize, 1), _LANE)))
        if tile_l * C * itemsize <= budget:
            tile_c = C
        else:
            tile_c = min(C, max(sub, _round_down(budget // (tile_l * itemsize), sub)))
    tile_p = max(1, min(P, budget // max(tile_c * tile_l * itemsize, 1)))

    kernel = functools.partial(_argmax_mid_axis_kernel, tile_c=tile_c, c_total=C,
                               neutral=_dtype_min(x3.dtype))
    out = pl.pallas_call(
        kernel,
        out_shape=jax.ShapeDtypeStruct((P, 1, S), jnp.int32),
        grid=(pl.cdiv(P, tile_p), pl.cdiv(S, tile_l), pl.cdiv(C, tile_c)),
        in_specs=[pl.BlockSpec((tile_p, tile_c, tile_l), lambda i, j, k: (i, k, j))],
        out_specs=pl.BlockSpec((tile_p, 1, tile_l), lambda i, j, k: (i, 0, j)),
        scratch_shapes=[pltpu.VMEM((tile_p, 1, tile_l), x3.dtype),
                        pltpu.VMEM((tile_p, 1, tile_l), jnp.int32)],
        compiler_params=pltpu.CompilerParams(
            dimension_semantics=("parallel", "parallel", "arbitrary")),
    )(x3)
    return out


def _argmax_along_dim(x, dim, keepdims, budget):
    d = dim % x.ndim
    C = x.shape[d]
    prefix = math.prod(x.shape[:d])
    suffix = math.prod(x.shape[d + 1:])

    if suffix == 1:
        # `dim` is (effectively) the last axis: free reshape, lane reduce.
        flat = _argmax_last_axis(x.reshape(prefix, C), budget)
    elif suffix <= _SMALL_SUFFIX:
        # Tiny trailing block: the direct kernel would run at suffix/128 lane
        # occupancy.  One XLA transpose pass + the lane-dense last-axis kernel wins.
        xt = jnp.moveaxis(x, d, -1)
        flat = _argmax_last_axis(xt.reshape(prefix * suffix, C), budget)
    else:
        # Free contiguous reshape: (prefix, C, suffix); reduce the middle axis.
        out3 = _argmax_mid_axis(x.reshape(prefix, C, suffix), budget)
        flat = out3.reshape(prefix * suffix)

    res = flat.reshape(x.shape[:d] + x.shape[d + 1:])
    if keepdims:
        res = res.reshape(x.shape[:d] + (1,) + x.shape[d + 1:])
    return res


def _argmax_flat(x, budget):
    """Global argmax over the flattened tensor: parallel per-block partials + tiny merge."""
    n = x.size
    # Free reshapes only (no host-side padding / concatenation).
    if n % _LANE == 0 and n >= _LANE:
        rows, cols = n // _LANE, _LANE
    elif x.ndim >= 2:
        rows, cols = math.prod(x.shape[:-1]), x.shape[-1]
    else:
        rows, cols = 1, n
    x2 = x.reshape(rows, cols)
    itemsize = jnp.dtype(x.dtype).itemsize
    sub = _native_sublane(x.dtype)

    if rows * cols * itemsize <= budget or rows <= sub:
        tile_r = rows
    else:
        tile_r = max(sub, _round_down(budget // max(cols * itemsize, 1), sub))
        tile_r = min(tile_r, _round_down(rows, sub))
    if tile_r * cols * itemsize <= budget or cols <= _LANE:
        tile_c = cols
    else:
        tile_c = max(_LANE, _round_down(budget // (tile_r * itemsize), _LANE))
        tile_c = min(tile_c, _round_down(cols, _LANE))

    nbr, nbc = pl.cdiv(rows, tile_r), pl.cdiv(cols, tile_c)
    kernel = functools.partial(_argmax_flat_partial_kernel, tile_r=tile_r, tile_c=tile_c,
                               rows=rows, cols=cols, neutral=_dtype_min(x.dtype))
    part_spec = pl.BlockSpec((1, _LANE), lambda i, j: (0, i * nbc + j))
    pmax, pidx = pl.pallas_call(
        kernel,
        out_shape=(jax.ShapeDtypeStruct((1, nbr * nbc * _LANE), x.dtype),
                   jax.ShapeDtypeStruct((1, nbr * nbc * _LANE), jnp.int32)),
        grid=(nbr, nbc),
        in_specs=[pl.BlockSpec((tile_r, tile_c), lambda i, j: (i, j))],
        out_specs=(part_spec, part_spec),
        compiler_params=pltpu.CompilerParams(
            dimension_semantics=("parallel", "parallel")),
    )(x2)

    # Stage 2: merge the few-KB partials with plain XLA (first-occurrence tie-break).
    best = jnp.max(pmax)
    return jnp.min(jnp.where(pmax == best, pidx, jnp.int32(_INT32_BIG))).astype(jnp.int32)


def pallas_argmax(x, dim=None, keepdims=True, *, block_budget_bytes=None):
    """Mirrors ArgMaxModule.forward (including the `if self.dim:` quirk: dim=0 or
    dim=None both go to the global-argmax path, like the torch module)."""
    budget = block_budget_bytes or _default_block_budget_bytes()
    if dim:
        return _argmax_along_dim(x, dim, keepdims, budget)
    return _argmax_flat(x, budget)


# ---------------------------------------------------------------------------
# demo / self-check
# ---------------------------------------------------------------------------
if __name__ == "__main__":
    key = jax.random.PRNGKey(0)
    x = jax.random.normal(key, (2, 4, 16, 16), dtype=jnp.float32)

    # ArgMaxModule(dim=1, keepDims=True)  -> mid-axis path (suffix=256)
    out = pallas_argmax(x, dim=1, keepdims=True)
    jax.block_until_ready(out)
    ref = jnp.argmax(x, axis=1, keepdims=True).astype(jnp.int32)
    assert out.shape == ref.shape and bool(jnp.all(out == ref))

    # ArgMaxModule(dim=2, keepDims=False) -> small-suffix moveaxis + lane-dense last-axis
    out = pallas_argmax(x, dim=2, keepdims=False)
    jax.block_until_ready(out)
    ref = jnp.argmax(x, axis=2).astype(jnp.int32)
    assert out.shape == ref.shape and bool(jnp.all(out == ref))

    # ArgMaxModule(dim=-1, keepDims=True) -> last-axis lane-dense (transposed store) path
    out = pallas_argmax(x, dim=-1, keepdims=True)
    jax.block_until_ready(out)
    ref = jnp.argmax(x, axis=-1, keepdims=True).astype(jnp.int32)
    assert out.shape == ref.shape and bool(jnp.all(out == ref))

    # ArgMaxModule() and ArgMaxModule(dim=0) -> global argmax (dim=0 is falsy in torch code)
    out = pallas_argmax(x, dim=None)
    jax.block_until_ready(out)
    assert int(out) == int(jnp.argmax(x))
    out = pallas_argmax(x, dim=0)
    jax.block_until_ready(out)
    assert int(out) == int(jnp.argmax(x))

    # Non-(8,128)-aligned shapes (ragged tiles / OOB-drop correctness guard).
    y = jax.random.normal(jax.random.PRNGKey(1), (3, 5, 37), dtype=jnp.float32)
    for d in (1, 2, -1):
        out = pallas_argmax(y, dim=d, keepdims=True)
        jax.block_until_ready(out)
        ref = jnp.argmax(y, axis=d, keepdims=True).astype(jnp.int32)
        assert out.shape == ref.shape and bool(jnp.all(out == ref)), d
    out = pallas_argmax(y, dim=None)
    jax.block_until_ready(out)
    assert int(out) == int(jnp.argmax(y))

    # Multi-block lane-dense last-axis path (several 128-row output slabs).
    v = jax.random.normal(jax.random.PRNGKey(4), (384, 64), dtype=jnp.float32)
    out = pallas_argmax(v, dim=-1, keepdims=False, block_budget_bytes=32768)
    jax.block_until_ready(out)
    assert bool(jnp.all(out == jnp.argmax(v, axis=-1).astype(jnp.int32)))

    # Tiny forced block budgets to exercise the tiled-reduction (carry) + ragged-C paths.
    z = jax.random.normal(jax.random.PRNGKey(2), (2, 50, 256), dtype=jnp.float32)
    out = pallas_argmax(z, dim=1, keepdims=True, block_budget_bytes=4096)
    jax.block_until_ready(out)
    assert bool(jnp.all(out == jnp.argmax(z, axis=1, keepdims=True).astype(jnp.int32)))

    w = jax.random.normal(jax.random.PRNGKey(3), (40, 300), dtype=jnp.float32)
    out = pallas_argmax(w, dim=-1, keepdims=False, block_budget_bytes=4096)
    jax.block_until_ready(out)
    assert bool(jnp.all(out == jnp.argmax(w, axis=-1).astype(jnp.int32)))
    out = pallas_argmax(w, dim=None, block_budget_bytes=4096)
    jax.block_until_ready(out)
    assert int(out) == int(jnp.argmax(w))

    print("KERNEL_OK")
</pallas_src>

<mosaic_0001>
module attributes {stable_mosaic.version = 11 : i64} {
  func.func @_argmax_mid_axis_kernel(%arg0: i32, %arg1: i32, %arg2: i32, %arg3: memref<2x4x256xf32, #tpu.memory_space<vmem>>, %arg4: memref<2x1x256xi32, #tpu.memory_space<vmem>>, %arg5: memref<2x1x256xf32, #tpu.memory_space<vmem>>, %arg6: memref<2x1x256xi32, #tpu.memory_space<vmem>>) attributes {dimension_semantics = [#tpu.dimension_semantics<parallel>, #tpu.dimension_semantics<parallel>, #tpu.dimension_semantics<arbitrary>], iteration_bounds = array<i64: 1, 1, 1>, scalar_prefetch = 0 : i64, scratch_operands = 2 : i64, tpu.core_type = #tpu.core_type<tc>, window_params = [{transform_indices = @transform_0, window_bounds = array<i64: 2, 4, 256>}, {transform_indices = @transform_1, window_bounds = array<i64: 2, 1, 256>}]} {
    %c0_i32 = arith.constant 0 : i32
    %0 = arith.cmpi eq, %arg2, %c0_i32 : i32
    %1 = arith.extui %0 : i1 to i32
    %c0_i32_0 = arith.constant 0 : i32
    %2 = arith.cmpi ne, %1, %c0_i32_0 : i32
    scf.if %2 {
      %cst_19 = arith.constant 0xFF800000 : f32
      %30 = vector.broadcast %cst_19 : f32 to vector<2x1x256xf32>
      %c0_20 = arith.constant 0 : index
      %c0_21 = arith.constant 0 : index
      %c0_22 = arith.constant 0 : index
      %31 = vector.load %arg5[%c0_20, %c0_21, %c0_22] : memref<2x1x256xf32, #tpu.memory_space<vmem>>, vector<2x1x256xf32>
      tpu.vector_store %arg5[%c0_20, %c0_21, %c0_22], %30 {strides = array<i32>} : memref<2x1x256xf32, #tpu.memory_space<vmem>>, vector<2x1x256xf32>,
      %c2147483647_i32 = arith.constant 2147483647 : i32
      %32 = vector.broadcast %c2147483647_i32 : i32 to vector<2x1x256xi32>
      %c0_23 = arith.constant 0 : index
      %c0_24 = arith.constant 0 : index
      %c0_25 = arith.constant 0 : index
      %33 = vector.load %arg6[%c0_23, %c0_24, %c0_25] : memref<2x1x256xi32, #tpu.memory_space<vmem>>, vector<2x1x256xi32>
      tpu.vector_store %arg6[%c0_23, %c0_24, %c0_25], %32 {strides = array<i32>} : memref<2x1x256xi32, #tpu.memory_space<vmem>>, vector<2x1x256xi32>,
    } else {
    }
    %c0 = arith.constant 0 : index
    %c0_1 = arith.constant 0 : index
    %c0_2 = arith.constant 0 : index
    %3 = vector.load %arg3[%c0, %c0_1, %c0_2] : memref<2x4x256xf32, #tpu.memory_space<vmem>>, vector<2x4x256xf32>
    %4 = tpu.iota {dimensions = array<i32: 1>} : vector<2x4x256xi32>
    %cst = arith.constant dense<0xFF800000> : vector<2x256xf32>
    %5 = vector.multi_reduction <maximumf>, %3, %cst [1] : vector<2x4x256xf32> to vector<2x256xf32>
    %6 = vector.shape_cast %5 : vector<2x256xf32> to vector<2x1x256xf32>
    %7 = vector.broadcast %6 : vector<2x1x256xf32> to vector<2x4x256xf32>
    %8 = arith.cmpf oeq, %3, %7 : vector<2x4x256xf32>
    %c4_i32 = arith.constant 4 : i32
    %9 = vector.broadcast %c4_i32 : i32 to vector<2x4x256xi32>
    %10 = arith.select %8, %4, %9 : vector<2x4x256xi1>, vector<2x4x256xi32>
    %cst_3 = arith.constant dense<2147483647> : vector<2x256xi32>
    %11 = vector.multi_reduction <minsi>, %10, %cst_3 [1] : vector<2x4x256xi32> to vector<2x256xi32>
    %12 = vector.shape_cast %11 : vector<2x256xi32> to vector<2x1x256xi32>
    %c4_i32_4 = arith.constant 4 : i32
    %13 = arith.muli %arg2, %c4_i32_4 : i32
    %14 = vector.broadcast %13 : i32 to vector<2x1x256xi32>
    %15 = arith.addi %12, %14 : vector<2x1x256xi32>
    %c0_5 = arith.constant 0 : index
    %c0_6 = arith.constant 0 : index
    %c0_7 = arith.constant 0 : index
    %16 = vector.load %arg5[%c0_5, %c0_6, %c0_7] : memref<2x1x256xf32, #tpu.memory_space<vmem>>, vector<2x1x256xf32>
    %c0_8 = arith.constant 0 : index
    %c0_9 = arith.constant 0 : index
    %c0_10 = arith.constant 0 : index
    %17 = vector.load %arg6[%c0_8, %c0_9, %c0_10] : memref<2x1x256xi32, #tpu.memory_space<vmem>>, vector<2x1x256xi32>
    %18 = arith.cmpf ogt, %6, %16 : vector<2x1x256xf32>
    %19 = arith.cmpf oeq, %6, %16 : vector<2x1x256xf32>
    %20 = arith.cmpi slt, %15, %17 : vector<2x1x256xi32>
    %21 = arith.andi %19, %20 : vector<2x1x256xi1>
    %22 = arith.ori %18, %21 : vector<2x1x256xi1>
    %23 = arith.select %22, %6, %16 : vector<2x1x256xi1>, vector<2x1x256xf32>
    %c0_11 = arith.constant 0 : index
    %c0_12 = arith.constant 0 : index
    %c0_13 = arith.constant 0 : index
    %24 = vector.load %arg5[%c0_11, %c0_12, %c0_13] : memref<2x1x256xf32, #tpu.memory_space<vmem>>, vector<2x1x256xf32>
    tpu.vector_store %arg5[%c0_11, %c0_12, %c0_13], %23 {strides = array<i32>} : memref<2x1x256xf32, #tpu.memory_space<vmem>>, vector<2x1x256xf32>,
    %25 = arith.select %22, %15, %17 : vector<2x1x256xi1>, vector<2x1x256xi32>
    %c0_14 = arith.constant 0 : index
    %c0_15 = arith.constant 0 : index
    %c0_16 = arith.constant 0 : index
    %26 = vector.load %arg6[%c0_14, %c0_15, %c0_16] : memref<2x1x256xi32, #tpu.memory_space<vmem>>, vector<2x1x256xi32>
    tpu.vector_store %arg6[%c0_14, %c0_15, %c0_16], %25 {strides = array<i32>} : memref<2x1x256xi32, #tpu.memory_space<vmem>>, vector<2x1x256xi32>,
    %c0_i32_17 = arith.constant 0 : i32
    %27 = arith.cmpi eq, %arg2, %c0_i32_17 : i32
    %28 = arith.extui %27 : i1 to i32
    %c0_i32_18 = arith.constant 0 : i32
    %29 = arith.cmpi ne, %28, %c0_i32_18 : i32
    scf.if %29 {
      %c0_19 = arith.constant 0 : index
      %c0_20 = arith.constant 0 : index
      %c0_21 = arith.constant 0 : index
      %30 = vector.load %arg6[%c0_19, %c0_20, %c0_21] : memref<2x1x256xi32, #tpu.memory_space<vmem>>, vector<2x1x256xi32>
      %c0_22 = arith.constant 0 : index
      %c0_23 = arith.constant 0 : index
      %c0_24 = arith.constant 0 : index
      %31 = vector.load %arg4[%c0_22, %c0_23, %c0_24] : memref<2x1x256xi32, #tpu.memory_space<vmem>>, vector<2x1x256xi32>
      tpu.vector_store %arg4[%c0_22, %c0_23, %c0_24], %30 {strides = array<i32>} : memref<2x1x256xi32, #tpu.memory_space<vmem>>, vector<2x1x256xi32>,
    } else {
    }
    return
  }
  func.func @transform_0(%arg0: i32, %arg1: i32, %arg2: i32) -> (i32, i32, i32) {
    %c0_i32 = arith.constant 0 : i32
    return %arg0, %arg2, %arg1 : i32, i32, i32
  }
  func.func @transform_1(%arg0: i32, %arg1: i32, %arg2: i32) -> (i32, i32, i32) {
    %c0_i32 = arith.constant 0 : i32
    %c0_i32_0 = arith.constant 0 : i32
    return %arg0, %c0_i32, %arg1 : i32, i32, i32
  }
}

</mosaic_0001>

<bundles_post_ra>
// kernel: tpu_custom_call.1
= control target key start
LH: loop header
LB: loop body
LE: loop exit
PB: predicated region body
PF: predicated region fallthrough
CT: control target
= control target key end

     0   :  { %6 = vsyncpa [#allocation5], 0  ;;  %s418_s0 = inlined_call_operand.hbm [shape: f32[2,4,256], index: 0, kind: input, shape index: {}]   ;;  %s419_s1 = inlined_call_operand.hbm [shape: s32[2,1,256], index: 1, kind: output, shape index: {}]  }
   0x1   :  { %7 = vsyncpa [#allocation6], 0  ;;  %s12_s8 = sshll.u32 %s418_s0, 4  ;;  %s310_s9 = smov [#allocation4]   ;;  %s13_s8 = int_to_ptr.hbm [resolvable:$true] %s12_s8 }
   0x2   :  { %s14_s10 = sshll.u32 %s310_s9, 4  ;;  %s311_s11 = smov 128   ;;  %s15_s10 = int_to_ptr.vmem [resolvable:$true] %s14_s10 }
   0x3   :  { %s312_s12 = smov 8  }
   0x4   :  { %20 = dma.hbm_to_vmem [thread:$0]  %s13_s8, 256, %s15_s10, [#allocation5], %s311_s11, %s311_s11, %s312_s12  }
   0x5   :  { %306 = dma.done.wait [#allocation5], 256  }
   0x6   :  { %307 = vsyncadd [#allocation5], 4294967040  ;;  %v29_v0 = vlaneseq  ;;  %v313_v2 = vmov -inf   ;;  %v314_v3 = vmov 2147483647   ;;  %v37_v4 = vld [vmem:[#allocation4] sm:$0xff] }
   0x7   :  { %v38_v5 = vld [vmem:[#allocation4 + $0x8] sm:$0xff]  ;;  %43 = vst [vmem:[#allocation1] ss:$2 sm:$0xff] %v37_v4  ;;  %vm54_vm1 = vcmask 1043456   ;;  %v315_v23 = vmov 839922192  }
   0x8   :  { %vm332_vm0 = vcmp.lt.s32.totalorder %v29_v0, 256  ;;  %47 = vst [vmem:[#allocation1 + $0x10] ss:$2 sm:$0xff] %v38_v5  ;;  %v96_v24 = vunpack.c.l.s4 %v315_v23  ;;  %v40_v30 = vshrl.u32 %v29_v0, 7  ;;  %s316_s0 = smov [#allocation7]   ;;  %s236_s16 = sshll.u32 %s419_s1, 4  ;;  %s237_s16 = int_to_ptr.hbm [resolvable:$true] %s236_s16 }
   0x9   :  { %33 = vst.msk [vmem:[#allocation2] sm:$0x3] %vm332_vm0, %v313_v2  ;;  %s234_s13 = sshll.u32 %s316_s0, 4  ;;  %s317_s17 = smov 32   ;;  %s235_s13 = int_to_ptr.vmem [resolvable:$true] %s234_s13 }
   0xa   :  { %34 = vst.msk [vmem:[#allocation2 + $0x2] sm:$0x3] %vm332_vm0, %v313_v2  ;;  %v97_v34 = vunpack.c.0.s8 %v96_v24  ;;  %s318_s18 = smov 2  }
   0xb   :  { %35 = vst.msk [vmem:[#allocation3] sm:$0x3] %vm332_vm0, %v314_v3 }
   0xc   :  { %36 = vst.msk [vmem:[#allocation3 + $0x2] sm:$0x3] %vm332_vm0, %v314_v3  ;;  %v98_v41 = vperm.slane %v40_v30, %v97_v34 }
   0xe   :  { %v44_v6 = vld.sshfl [vmem:[#allocation1] sm:$0xff pattern:$0x75316420]  ;;  %v45_v7 = vld.sshfl [vmem:[#allocation1 + $0x8] sm:$0xff pattern:$0x75316420] }
   0xf   :  { %v55_v8 = vsel %vm54_vm1, %v44_v6, -inf  ;;  %v62_v9 = vsel %vm54_vm1, %v45_v7, -inf  ;;  %v48_v10 = vld.sshfl [vmem:[#allocation1 + $0x10] sm:$0xff pattern:$0x75316420] }
  0x10   :  { %v56_v11 = vrot.slane %v55_v8, 4  ;;  %v63_v12 = vrot.slane %v62_v9, 4  ;;  %v49_v13 = vld.sshfl [vmem:[#allocation1 + $0x18] sm:$0xff pattern:$0x75316420]  ;;  %v69_v14 = vsel %vm54_vm1, %v48_v10, -inf }
  0x11   :  { %v70_v15 = vrot.slane %v69_v14, 4  ;;  %v76_v16 = vsel %vm54_vm1, %v49_v13, -inf  ;;  %v154_v58 = vld [vmem:[#allocation2] sm:$0x3] }
  0x12   :  { %v57_v17 = vmax.f32 %v55_v8, %v56_v11  ;;  %v64_v18 = vmax.f32 %v62_v9, %v63_v12  ;;  %v77_v19 = vrot.slane %v76_v16, 4  ;;  %v366_v3 = vld [vmem:[#allocation3] sm:$0x3]  ;;  %v155_v9 = vld [vmem:[#allocation2 + $0x2] sm:$0x3] }
  0x13   :  { %v71_v20 = vmax.f32 %v69_v14, %v70_v15  ;;  %v370_v10 = vld [vmem:[#allocation3 + $0x2] sm:$0x3]  ;;  %v176_v13 = vperm.slane %v366_v3, 0 }
  0x14   :  { %v58_v21 = vrot.slane %v57_v17, 2  ;;  %v65_v22 = vrot.slane %v64_v18, 2  ;;  %v78_v25 = vmax.f32 %v76_v16, %v77_v19  ;;  %v162_v19 = vperm.slane %v155_v9, 0 }
  0x15   :  { %v72_v26 = vrot.slane %v71_v20, 2 }
  0x16   :  { %v59_v27 = vmax.f32 %v57_v17, %v58_v21  ;;  %v66_v28 = vmax.f32 %v64_v18, %v65_v22  ;;  %v79_v29 = vrot.slane %v78_v25, 2  ;;  %v177_v17 = vperm.slane %v366_v3, 1 }
  0x17   :  { %v73_v31 = vmax.f32 %v71_v20, %v72_v26  ;;  %v178_v20 = vperm.slane %v370_v10, 0  ;;  %v179_v26 = vperm.slane %v370_v10, 1 }
  0x18   :  { %v60_v32 = vrot.slane %v59_v27, 1  ;;  %v67_v33 = vrot.slane %v66_v28, 1  ;;  %v80_v35 = vmax.f32 %v78_v25, %v79_v29 }
  0x19   :  { %v74_v37 = vrot.slane %v73_v31, 1 }
  0x1a   :  { %v348_v36 = vmax.f32 %v66_v28, %v67_v33  ;;  %v81_v38 = vrot.slane %v80_v35, 1  ;;  %v350_v39 = vmax.f32 %v59_v27, %v60_v32  ;;  %v163_v28 = vperm.slane %v155_v9, 1 }
  0x1b   :  { %v357_v44 = vmax.f32 %v73_v31, %v74_v37 }
  0x1c   :  { %v87_v40 = vrot.slane %v348_v36, 4  ;;  %v353_v42 = vmax.f32 %v80_v35, %v81_v38 }
  0x1e   :  { %v89_v43 = vsel %vm54_vm1, %v350_v39, %v87_v40  ;;  %v88_v45 = vrot.slane %v353_v42, 4 }
  0x1f   :  { %vm93_vm2 = vcmp.eq.f32.partialorder %v37_v4, %v89_v43  ;;  %v368_v4 = vperm.slane %v154_v58, 0 }
  0x20   :  { %v99_v46 = vsel %vm93_vm2, %v98_v41, 4  ;;  %v90_v47 = vsel %vm54_vm1, %v357_v44, %v88_v45 }
  0x21   :  { %101 = vst [vmem:[#allocation1] ss:$2 sm:$0xff] %v99_v46  ;;  %vm94_vm3 = vcmp.eq.f32.partialorder %v38_v5, %v90_v47  ;;  %v161_v5 = vperm.slane %v154_v58, 1  ;;  %vm172_vm14 = vcmp.eq.f32.partialorder %v350_v39, %v368_v4 }
  0x22   :  { %v100_v48 = vsel %vm94_vm3, %v98_v41, 4 }
  0x23   :  { %105 = vst [vmem:[#allocation1 + $0x10] ss:$2 sm:$0xff] %v100_v48  ;;  %vm173_vm3 = vcmp.eq.f32.partialorder %v348_v36, %v161_v5 }
  0x28   :  { %v102_v49 = vld.sshfl [vmem:[#allocation1] sm:$0xff pattern:$0x75316420]  ;;  %v103_v50 = vld.sshfl [vmem:[#allocation1 + $0x8] sm:$0xff pattern:$0x75316420] }
  0x29   :  { %v108_v51 = vsel %vm54_vm1, %v102_v49, 2147483647  ;;  %v118_v52 = vsel %vm54_vm1, %v103_v50, 2147483647 }
  0x2a   :  { %v109_v53 = vrot.slane %v108_v51, 4  ;;  %v119_v54 = vrot.slane %v118_v52, 4  ;;  %v106_v55 = vld.sshfl [vmem:[#allocation1 + $0x10] sm:$0xff pattern:$0x75316420] }
  0x2b   :  { %v107_v56 = vld.sshfl [vmem:[#allocation1 + $0x18] sm:$0xff pattern:$0x75316420]  ;;  %v128_v57 = vsel %vm54_vm1, %v106_v55, 2147483647 }
  0x2c   :  { %vm110_vm4 = vcmp.lt.s32.totalorder %v108_v51, %v109_v53  ;;  %vm120_vm5 = vcmp.lt.s32.totalorder %v118_v52, %v119_v54  ;;  %v129_v59 = vrot.slane %v128_v57, 4  ;;  %v138_v60 = vsel %vm54_vm1, %v107_v56, 2147483647 }
  0x2d   :  { %v111_v61 = vsel %vm110_vm4, %v108_v51, %v109_v53  ;;  %v121_v62 = vsel %vm120_vm5, %v118_v52, %v119_v54  ;;  %v139_v63 = vrot.slane %v138_v60, 4 }
  0x2e   :  { %v112_v0 = vrot.slane %v111_v61, 2  ;;  %v122_v2 = vrot.slane %v121_v62, 2  ;;  %vm130_vm6 = vcmp.lt.s32.totalorder %v128_v57, %v129_v59 }
  0x2f   :  { %v131_v6 = vsel %vm130_vm6, %v128_v57, %v129_v59  ;;  %vm140_vm7 = vcmp.lt.s32.totalorder %v138_v60, %v139_v63  ;;  %vm168_vm6 = vcmp.gt.f32.partialorder %v350_v39, %v368_v4 }
  0x30   :  { %vm113_vm8 = vcmp.lt.s32.totalorder %v111_v61, %v112_v0  ;;  %vm123_vm9 = vcmp.lt.s32.totalorder %v121_v62, %v122_v2  ;;  %v132_v7 = vrot.slane %v131_v6, 2  ;;  %v141_v8 = vsel %vm140_vm7, %v138_v60, %v139_v63 }
  0x31   :  { %v114_v11 = vsel %vm113_vm8, %v111_v61, %v112_v0  ;;  %v124_v12 = vsel %vm123_vm9, %v121_v62, %v122_v2  ;;  %v142_v14 = vrot.slane %v141_v8, 2  ;;  %vm169_vm9 = vcmp.gt.f32.partialorder %v348_v36, %v161_v5 }
  0x32   :  { %v115_v15 = vrot.slane %v114_v11, 1  ;;  %v125_v16 = vrot.slane %v124_v12, 1  ;;  %vm133_vm10 = vcmp.lt.s32.totalorder %v131_v6, %v132_v7 }
  0x33   :  { %v134_v18 = vsel %vm133_vm10, %v131_v6, %v132_v7  ;;  %vm143_vm11 = vcmp.lt.s32.totalorder %v141_v8, %v142_v14 }
  0x34   :  { %vm116_vm12 = vcmp.lt.s32.totalorder %v114_v11, %v115_v15  ;;  %vm126_vm13 = vcmp.lt.s32.totalorder %v124_v12, %v125_v16  ;;  %v135_v21 = vrot.slane %v134_v18, 1  ;;  %v144_v22 = vsel %vm143_vm11, %v141_v8, %v142_v14 }
  0x35   :  { %v117_v23 = vsel %vm116_vm12, %v114_v11, %v115_v15  ;;  %v127_v24 = vsel %vm126_vm13, %v124_v12, %v125_v16  ;;  %v145_v25 = vrot.slane %v144_v22, 1  ;;  %vm174_vm13 = vcmp.eq.f32.partialorder %v357_v44, %v162_v19 }
  0x36   :  { %vm180_vm15 = vcmp.lt.s32.totalorder %v117_v23, %v176_v13  ;;  %vm181_vm1 = vcmp.lt.s32.totalorder %v127_v24, %v177_v17  ;;  %vm136_vm2 = vcmp.lt.s32.totalorder %v134_v18, %v135_v21 }
  0x37   :  { %vm184_vm4 = vmand %vm172_vm14, %vm180_vm15  ;;  %v137_v27 = vsel %vm136_vm2, %v134_v18, %v135_v21  ;;  %vm146_vm5 = vcmp.lt.s32.totalorder %v144_v22, %v145_v25  ;;  %vm202_vm14 = vcmask 1040384   ;;  %vm175_vm15 = vcmp.eq.f32.partialorder %v353_v42, %v163_v28 }
  0x38   :  { %vm185_vm7 = vmand %vm173_vm3, %vm181_vm1  ;;  %v147_v29 = vsel %vm146_vm5, %v144_v22, %v145_v25  ;;  %vm182_vm8 = vcmp.lt.s32.totalorder %v137_v27, %v178_v20  ;;  %vm170_vm1 = vcmp.gt.f32.partialorder %v357_v44, %v162_v19 }
  0x39   :  { %vm382_vm10 = vmor %vm168_vm6, %vm184_vm4  ;;  %vm183_vm11 = vcmp.lt.s32.totalorder %v147_v29, %v179_v26  ;;  %vm171_vm4 = vcmp.gt.f32.partialorder %v353_v42, %v163_v28 }
  0x3a   :  { %vm189_vm12 = vmor %vm169_vm9, %vm185_vm7  ;;  %v192_v35 = vsel %vm382_vm10, %v350_v39, %v368_v4 }
  0x3b   :  { %v193_v31 = vsel %vm189_vm12, %v348_v36, %v161_v5  ;;  %vm186_vm2 = vmand %vm174_vm13, %vm182_vm8  ;;  %v214_v32 = vsel %vm189_vm12, %v127_v24, %v177_v17  ;;  %v213_v36 = vsel %vm382_vm10, %v117_v23, %v176_v13 }
  0x3c   :  { %v200_v33 = vrot.slane %v193_v31, 7  ;;  %vm187_vm3 = vmand %vm175_vm15, %vm183_vm11  ;;  %v217_v34 = vrot.slane %v214_v32, 7 }
  0x3d   :  { %vm190_vm5 = vmor %vm170_vm1, %vm186_vm2 }
  0x3e   :  { %v203_v37 = vsel %vm202_vm14, %v192_v35, %v200_v33  ;;  %vm191_vm6 = vmor %vm171_vm4, %vm187_vm3  ;;  %v219_v38 = vsel %vm202_vm14, %v213_v36, %v217_v34  ;;  %v194_v45 = vsel %vm190_vm5, %v357_v44, %v162_v19  ;;  %v215_v46 = vsel %vm190_vm5, %v137_v27, %v178_v20 }
  0x3f   :  { %211 = vst.msk [vmem:[#allocation2] sm:$0x3] %vm332_vm0, %v203_v37  ;;  %v195_v40 = vsel %vm191_vm6, %v353_v42, %v163_v28  ;;  %v216_v41 = vsel %vm191_vm6, %v147_v29, %v179_v26 }
  0x40   :  { %v201_v43 = vrot.slane %v195_v40, 7  ;;  %221 = vst.msk [vmem:[#allocation3] sm:$0x3] %vm332_vm0, %v219_v38  ;;  %v218_v39 = vrot.slane %v216_v41, 7 }
  0x42   :  { %v204_v47 = vsel %vm202_vm14, %v194_v45, %v201_v43  ;;  %v220_v48 = vsel %vm202_vm14, %v215_v46, %v218_v39 }
  0x43   :  { %212 = vst.msk [vmem:[#allocation2 + $0x2] sm:$0x3] %vm332_vm0, %v204_v47 }
  0x44   :  { %222 = vst.msk [vmem:[#allocation3 + $0x2] sm:$0x3] %vm332_vm0, %v220_v48 }
  0x47   :  { %v226_v42 = vld [vmem:[#allocation3] sm:$0x3] }
  0x48   :  { %228 = vst.msk [vmem:[#allocation7] sm:$0x3] %vm332_vm0, %v226_v42 }
  0x4b   :  { %v227_v44 = vld [vmem:[#allocation3 + $0x2] sm:$0x3] }
  0x4c   :  { %229 = vst.msk [vmem:[#allocation7 + $0x2] sm:$0x3] %vm332_vm0, %v227_v44 }
  0x4d   :  { %242 = dma.vmem_to_hbm [thread:$0]  %s235_s13, 64, %s237_s16, [#allocation6], %s317_s17, %s317_s17, %s318_s18  }
  0x4e   :  { %308 = dma.done.wait [#allocation6], 64  }
  0x4f   :  { %309 = vsyncadd [#allocation6], 4294967232 }
  0x50   :  { %247 = vsyncpa [#allocation5], 1 }
  0x51   :  { %248 = vsyncpa [#allocation6], 1 }

</bundles_post_ra>
